<compile_context>
chip_gen: v5e
topology: v5e:2x2
jax: 0.10.0
libtpu: 0.0.40
codegen_flags: <defaults>
</compile_context>

<pallas_src>
import jax
import jax.numpy as jnp
from jax import lax
from jax.experimental import pallas as pl
from jax.experimental.pallas import tpu as pltpu


def _maxpool_pad_kernel(x_ref, sel_ref, o_ref):
    """x_ref: (B, H, W) planes; sel_ref: (W, OW) 0/1 column selection (sel[c, j] = c == 2j);
    o_ref: (B, OH, OW) pooled planes."""
    B, H, W = x_ref.shape
    _, OH, OW = o_ref.shape
    dtype = x_ref.dtype
    itemsize = jnp.dtype(dtype).itemsize
    sub = max(8, 32 // itemsize)          # sublane tile (8 for f32, 16 for bf16)

    # ---- vertical 3-tap max; stride-2 row subsample done by sublane-strided ref reads ----
    t0 = x_ref[:, pl.ds(0, OH, stride=2), :]             # rows 0, 2, ..., 2*OH-2
    t1 = x_ref[:, pl.ds(1, OH, stride=2), :]             # rows 1, 3, ..., 2*OH-1
    v = jnp.maximum(t0, t1)
    n2 = (H - 1) // 2                                     # in-bounds rows for the dh=2 tap
    if n2 > 0:
        t2 = x_ref[:, pl.ds(2, n2, stride=2), :]          # rows 2, 4, ... (clipped at bottom)
        if n2 < OH:                                       # clipped last window -> -inf pad row
            t2 = jnp.concatenate(
                [t2, jnp.full((B, OH - n2, W), -jnp.inf, dtype=dtype)], axis=1)
        v = jnp.maximum(v, t2)

    # ---- horizontal 3-tap max at width W (shifted taps; right edge fused as -inf columns) ----
    tap1 = jnp.concatenate(
        [v[:, :, 1:], jnp.full((B, OH, 1), -jnp.inf, dtype=dtype)], axis=2)   # (B, OH, W)
    h = jnp.maximum(v, tap1)
    if W > 2:
        tap2 = jnp.concatenate(
            [v[:, :, 2:], jnp.full((B, OH, 2), -jnp.inf, dtype=dtype)], axis=2)
        h = jnp.maximum(h, tap2)

    # ---- column stride-2 subsample: one exact 0/1 selection matmul on the (idle) MXU ----
    # Pad OH up to the sublane tile so the merge/split reshapes are layout no-ops.
    OH_p = OH if OH % sub == 0 else OH + (sub - OH % sub)
    if OH_p != OH:
        h = jnp.concatenate([h, jnp.zeros((B, OH_p - OH, W), dtype=dtype)], axis=1)
    res = jnp.dot(h.reshape(B * OH_p, W), sel_ref[...],
                  preferred_element_type=jnp.float32,
                  precision=lax.Precision.HIGHEST)        # exact selection for finite f32/bf16
    res = res.reshape(B, OH_p, OW)
    if OH_p != OH:
        res = res[:, :OH, :]
    o_ref[...] = res.astype(o_ref.dtype)


def maxpool_pad(x):
    """Pallas TPU implementation of MaxPoolPad.forward for an NCHW floating tensor."""
    N, C, H, W = x.shape
    if not jnp.issubdtype(x.dtype, jnp.floating):
        raise ValueError("maxpool_pad expects a floating dtype")
    if H < 2 or W < 2:
        raise ValueError("maxpool_pad requires H >= 2 and W >= 2")

    OH, OW = H // 2, W // 2
    NC = N * C
    xr = x.reshape(NC, H, W)
    itemsize = jnp.dtype(x.dtype).itemsize

    # ---- generation-aware VMEM budget (v7x: 64 MiB/core, v5e/v6e: 128 MiB) ----
    try:
        info = pltpu.get_tpu_info()
        vmem_cap = int(getattr(info, "vmem_capacity_bytes", 0)) or (64 * 1024 * 1024)
    except Exception:  # pragma: no cover - conservative fallback (v7x per-core VMEM)
        vmem_cap = 64 * 1024 * 1024
    budget = int(0.4 * vmem_cap)          # ~25 MiB on v7x, ~51 MiB on v5e/v6e per grid step

    def rup(a, m):
        return -(-a // m) * m

    sub = max(8, 32 // itemsize)
    H_pad, W_pad = rup(H, sub), rup(W, 128)
    OH_pad, OW_pad = rup(OH, sub), rup(OW, 128)

    # Per-plane VMEM footprint: double-buffered input/output blocks + live intermediates.
    in_pp = H_pad * W_pad * itemsize * 2
    out_pp = OH_pad * OW_pad * itemsize * 2
    inter_pp = 4 * OH_pad * W_pad * max(itemsize, 4) + 2 * OH_pad * OW_pad * 4
    per_plane = in_pp + out_pp + inter_pp
    sel_bytes = rup(W, sub) * OW_pad * itemsize * 2       # constant selection matrix (dbl-buf)

    b_cap = max(1, (budget - sel_bytes) // per_plane)
    b_cap = min(b_cap, max(1, NC // 4))   # >= 4 grid steps when NC allows (2 per v7x core)
    B = int(min(b_cap, NC))
    grid = pl.cdiv(NC, B)                 # no divisor-of-NC requirement; partial last block OK

    footprint = B * per_plane + sel_bytes
    vmem_limit = int(min(0.8 * vmem_cap, max(1.5 * footprint, 32 * 1024 * 1024)))

    # Hoisted 0/1 column-selection matrix: sel[c, j] = 1 iff c == 2j.
    sel = (jnp.arange(W, dtype=jnp.int32)[:, None]
           == 2 * jnp.arange(OW, dtype=jnp.int32)[None, :]).astype(x.dtype)

    cost = pl.CostEstimate(
        flops=2 * NC * OH * W * OW + 5 * NC * OH * W,
        transcendentals=0,
        bytes_accessed=NC * H * W * itemsize + NC * OH * OW * itemsize + W * OW * itemsize,
    )

    out = pl.pallas_call(
        _maxpool_pad_kernel,
        out_shape=jax.ShapeDtypeStruct((NC, OH, OW), x.dtype),
        grid_spec=pltpu.PrefetchScalarGridSpec(
            num_scalar_prefetch=0,
            grid=(grid,),
            in_specs=[
                pl.BlockSpec((B, H, W), lambda i: (i, 0, 0)),
                pl.BlockSpec((W, OW), lambda i: (0, 0)),   # constant block -> loaded once
            ],
            out_specs=pl.BlockSpec((B, OH, OW), lambda i: (i, 0, 0)),
        ),
        compiler_params=pltpu.CompilerParams(
            dimension_semantics=("parallel",),
            vmem_limit_bytes=vmem_limit,
        ),
        cost_estimate=cost,
    )(xr, sel)
    return out.reshape(N, C, OH, OW)


def maxpool_pad_reference(x):
    """Pure-JAX reference mirroring the PyTorch ops exactly."""
    xz = jnp.pad(x, ((0, 0), (0, 0), (1, 0), (1, 0)))            # ZeroPad2d((1,0,1,0))
    pooled = lax.reduce_window(
        xz, -jnp.inf, lax.max,
        window_dimensions=(1, 1, 3, 3),
        window_strides=(1, 1, 2, 2),
        padding=((0, 0), (0, 0), (1, 1), (1, 1)))                # MaxPool2d(3, 2, padding=1)
    return pooled[:, :, 1:, 1:]                                  # x[:, :, 1:, 1:]


if __name__ == "__main__":
    key = jax.random.PRNGKey(0)

    # Main shape from the module context.
    x = jax.random.normal(key, (2, 4, 16, 16), dtype=jnp.float32)
    y = jax.block_until_ready(maxpool_pad(x))
    y_ref = maxpool_pad_reference(x)
    assert y.shape == y_ref.shape == (2, 4, 8, 8), (y.shape, y_ref.shape)
    assert jnp.allclose(y, y_ref, rtol=1e-6, atol=1e-6), float(jnp.max(jnp.abs(y - y_ref)))

    # Extra coverage: odd spatial dims, lane-wide W, and NC that forces a partial last block.
    for i, shape in enumerate([(1, 3, 15, 17), (1, 2, 16, 256), (1, 13, 16, 16)]):
        xi = jax.random.normal(jax.random.PRNGKey(i + 1), shape, dtype=jnp.float32)
        yi = jax.block_until_ready(maxpool_pad(xi))
        yri = maxpool_pad_reference(xi)
        assert yi.shape == yri.shape, (shape, yi.shape, yri.shape)
        assert jnp.allclose(yi, yri, rtol=1e-6, atol=1e-6), shape

    print("KERNEL_OK")
</pallas_src>

<mosaic_0001>
module attributes {stable_mosaic.version = 11 : i64} {
  func.func @_maxpool_pad_kernel(%arg0: i32, %arg1: memref<2x16x16xf32, #tpu.memory_space<vmem>>, %arg2: memref<16x8xf32, #tpu.memory_space<vmem>>, %arg3: memref<2x8x8xf32, #tpu.memory_space<vmem>>) attributes {dimension_semantics = [#tpu.dimension_semantics<parallel>], iteration_bounds = array<i64: 4>, scalar_prefetch = 0 : i64, scratch_operands = 0 : i64, tpu.core_type = #tpu.core_type<tc>, window_params = [{transform_indices = @transform_0, window_bounds = array<i64: 2, 16, 16>}, {pipeline_mode = #tpu.pipeline_mode<synchronous>, transform_indices = @transform_1, window_bounds = array<i64: 16, 8>}, {transform_indices = @transform_2, window_bounds = array<i64: 2, 8, 8>}]} {
    %c0 = arith.constant 0 : index
    %c0_0 = arith.constant 0 : index
    %c0_1 = arith.constant 0 : index
    %0 = tpu.strided_load %arg1[%c0, %c0_0, %c0_1] {strides = array<i32: 1, 2, 1>} : memref<2x16x16xf32, #tpu.memory_space<vmem>>, vector<2x8x16xf32>
    %c0_2 = arith.constant 0 : index
    %c1 = arith.constant 1 : index
    %c0_3 = arith.constant 0 : index
    %1 = tpu.strided_load %arg1[%c0_2, %c1, %c0_3] {strides = array<i32: 1, 2, 1>} : memref<2x16x16xf32, #tpu.memory_space<vmem>>, vector<2x8x16xf32>
    %2 = arith.maximumf %0, %1 : vector<2x8x16xf32>
    %c0_4 = arith.constant 0 : index
    %c2 = arith.constant 2 : index
    %c0_5 = arith.constant 0 : index
    %3 = tpu.strided_load %arg1[%c0_4, %c2, %c0_5] {strides = array<i32: 1, 2, 1>} : memref<2x16x16xf32, #tpu.memory_space<vmem>>, vector<2x7x16xf32>
    %cst = arith.constant 0xFF800000 : f32
    %4 = vector.broadcast %cst : f32 to vector<2x1x16xf32>
    %5 = tpu.concatenate %3, %4 in 1 : vector<2x7x16xf32>, vector<2x1x16xf32> -> vector<2x8x16xf32>
    %6 = arith.maximumf %2, %5 : vector<2x8x16xf32>
    %7 = vector.extract_strided_slice %6 {offsets = [0, 0, 1], sizes = [2, 8, 15], strides = [1, 1, 1]} : vector<2x8x16xf32> to vector<2x8x15xf32>
    %cst_6 = arith.constant 0xFF800000 : f32
    %8 = vector.broadcast %cst_6 : f32 to vector<2x8x1xf32>
    %9 = tpu.concatenate %7, %8 in 2 : vector<2x8x15xf32>, vector<2x8x1xf32> -> vector<2x8x16xf32>
    %10 = arith.maximumf %6, %9 : vector<2x8x16xf32>
    %11 = vector.extract_strided_slice %6 {offsets = [0, 0, 2], sizes = [2, 8, 14], strides = [1, 1, 1]} : vector<2x8x16xf32> to vector<2x8x14xf32>
    %cst_7 = arith.constant 0xFF800000 : f32
    %12 = vector.broadcast %cst_7 : f32 to vector<2x8x2xf32>
    %13 = tpu.concatenate %11, %12 in 2 : vector<2x8x14xf32>, vector<2x8x2xf32> -> vector<2x8x16xf32>
    %14 = arith.maximumf %10, %13 : vector<2x8x16xf32>
    %15 = vector.shape_cast %14 : vector<2x8x16xf32> to vector<16x16xf32>
    %c0_8 = arith.constant 0 : index
    %c0_9 = arith.constant 0 : index
    %16 = vector.load %arg2[%c0_8, %c0_9] : memref<16x8xf32, #tpu.memory_space<vmem>>, vector<16x8xf32>
    %cst_10 = arith.constant dense<0.000000e+00> : vector<16x8xf32>
    %17 = tpu.matmul %15, %16, %cst_10 {dimension_numbers = #tpu.dot_dimension_numbers<[1], [0], [0], [1], [0, 0, 1, 1], [], []>, precision = #tpu.contract_precision<fp32>} : vector<16x16xf32>, vector<16x8xf32>, vector<16x8xf32> -> vector<16x8xf32>
    %18 = vector.shape_cast %17 : vector<16x8xf32> to vector<2x8x8xf32>
    %c0_11 = arith.constant 0 : index
    %c0_12 = arith.constant 0 : index
    %c0_13 = arith.constant 0 : index
    %19 = vector.load %arg3[%c0_11, %c0_12, %c0_13] : memref<2x8x8xf32, #tpu.memory_space<vmem>>, vector<2x8x8xf32>
    tpu.vector_store %arg3[%c0_11, %c0_12, %c0_13], %18 {strides = array<i32>} : memref<2x8x8xf32, #tpu.memory_space<vmem>>, vector<2x8x8xf32>,
    return
  }
  func.func @transform_0(%arg0: i32) -> (i32, i32, i32) {
    %c0_i32 = arith.constant 0 : i32
    %c0_i32_0 = arith.constant 0 : i32
    %c0_i32_1 = arith.constant 0 : i32
    return %arg0, %c0_i32, %c0_i32_0 : i32, i32, i32
  }
  func.func @transform_1(%arg0: i32) -> (i32, i32) {
    %c0_i32 = arith.constant 0 : i32
    %c0_i32_0 = arith.constant 0 : i32
    %c0_i32_1 = arith.constant 0 : i32
    return %c0_i32, %c0_i32_0 : i32, i32
  }
  func.func @transform_2(%arg0: i32) -> (i32, i32, i32) {
    %c0_i32 = arith.constant 0 : i32
    %c0_i32_0 = arith.constant 0 : i32
    %c0_i32_1 = arith.constant 0 : i32
    return %arg0, %c0_i32, %c0_i32_0 : i32, i32, i32
  }
}

</mosaic_0001>

<bundles_post_ra>
// kernel: tpu_custom_call.1
= control target key start
LH: loop header
LB: loop body
LE: loop exit
PB: predicated region body
PF: predicated region fallthrough
CT: control target
= control target key end

     0   :  { %7 = vsyncpa [#allocation3], 0  ;;  %s832_s0 = inlined_call_operand.hbm [shape: f32[8,16,16], index: 0, kind: input, shape index: {}]   ;;  %s833_s1 = inlined_call_operand.vmem [shape: f32[16,8], index: 1, kind: input, shape index: {}]   ;;  %s834_s2 = inlined_call_operand.hbm [shape: f32[8,8,8], index: 2, kind: output, shape index: {}]  }
   0x1   :  { %9 = vsyncpa [#allocation3 + $0x1], 0 }
   0x2   :  { %10 = vsyncpa [#allocation4], 0 }
   0x3   :  { %12 = vsyncpa [#allocation4 + $0x1], 0  ;;  %s698_s9 = smov 0   ;;  %s700_s10 = smov 0  }
   0x4   :  { %s702_s11 = smov 0   ;;  %s704_s12 = smov 0  }
   0x5 LB: > { %s719_s13 = sadd.s32 4294967295, %s675_s12   ;;  %s500_s14 = sadd.s32 4294967294, %s675_s12   ;;  %s675_s12 = sphi %s704_s12, %s843_s12   ;;  %s671_s11 = sphi %s702_s11, %s842_s11   ;;  %s667_s10 = sphi %s700_s10, %s841_s10   ;;  %s663_s9 = sphi %s698_s9, %s840_s9  }
   0x6   : > { %s723_s15 = sadd.s32 1, %s675_s12   ;;  %s25_s16 = sadd.s32 1, %s671_s11 }
   0x7   : > { %s22_s17 = ssub.s32 %s675_s12, %s723_s15  ;;  %p32_p0 = scmp.ne.s32.totalorder %s671_s11, %s667_s10 }
   0x8   : > { %p23_p1 = scmp.eq.s32.totalorder %s22_s17, 0  ;;  %p33_p2 = scmp.eq.s32.totalorder %s675_s12, 0 }
   0x9   : > { %p38_p3 = scmp.ne.s32.totalorder %s667_s10, %s663_s9  ;;  %p39_p4 = scmp.eq.s32.totalorder %s719_s13, 0 }
   0xa   : > { %s735_s18 = scalar_select %p23_p1, %s671_s11, %s25_s16  }
   0xb   : > { %p737_p5 = por %p33_p2, %p32_p0  ;;  %p741_p6 = por %p39_p4, %p38_p3 }
   0xc   : > { %p83_p7 = scmp.eq.s32.totalorder %s719_s13, 3  ;;  %p89_p8 = scmp.eq.s32.totalorder %s500_s14, 3 }
   0xd   : > { %p539_p9 = scmp.lt.s32.totalorder %s675_s12, 4  ;;  %s112_s23 = sand.u32 1, %s671_s11  }
   0xe   : > { %p747_p10 = por %p83_p7, %p32_p0  ;;  %p751_p11 = por %p89_p8, %p38_p3 }
   0xf   : > { %s521_s24 = sshll.u32 %s675_s12, 5  ;;  %s503_s25 = sshll.u32 %s112_s23, 5 }
  0x10   : > { %s122_s28 = scalar_lea.hbm %s832_s0, %s521_s24  ;;  %s116_s30 = scalar_lea.vmem [#allocation2], %s503_s25 }
  0x11   : > { %s123_s29 = sshll.u32 %s122_s28, 4  ;;  %s125_s3 = sshll.u32 %s116_s30, 4  ;;  %s124_s29 = int_to_ptr.hbm [resolvable:$true] %s123_s29  ;;  %s126_s3 = int_to_ptr.vmem [resolvable:$true] %s125_s3 }
  0x12   : > { %p762_p12 = pnand %p539_p9, %p737_p5  ;;  %p507_p13 = scmp.ge.s32.totalorder %s675_s12, 1 }
  0x13   : > { %p133_p0 = scmp.lt.s32.totalorder %s675_s12, 5  ;;  %s113_s5 = scalar_lea.sflag [#allocation3], %s112_s23 }
  0x14   : > { %s579_s6 = sshra.s32 %s124_s29, 4  ;;  %p583_p2 = pneg %p762_p12  ;;  %s580_s6 = int_to_ptr.hbm [resolvable:$true] %s579_s6 }
  0x15   : > { %s581_s7 = scalar_lea.hbm %s580_s6, 32  ;;  %s586_s16 = scalar_lea.hbm %s832_s0, 128 }
  0x16   : > { %p582_p1 = scmp.ne.s32.totalorder %s580_s6, %s581_s7  ;;  %p587_p5 = scmp.lt.s32.totalorder %s580_s6, %s832_s0 }
  0x17   : > { %p588_p7 = scmp.lt.s32.totalorder %s586_s16, %s581_s7 }
  0x18   : > { %p584_p3 = pnand %p583_p2, %p582_p1 }
  0x19   : > { %p589_p8 = por %p588_p7, %p587_p5 }
  0x1a   : > { %p585_p4 = pneg %p584_p3 }
  0x1c   : > { %p590_p9 = pnand %p589_p8, %p585_p4 }
  0x1e   : > { %593 = shalt.err (!%p590_p9)
}
  0x1f   : > { %s677_s23 = smov 128   ;;  %s678_s24 = smov 8  }
  0x20   : > { %534 = dma.hbm_to_vmem [thread:$0]  (!%p762_p12), %s124_s29, 512, %s126_s3, %s113_s5, %s677_s23, %s677_s23, %s678_s24  }
  0x21   : > { %p134_p1 = pnand %p507_p13, %p133_p0 }
  0x22   : > { %s783_s25 = sand.u32 (!%p134_p1), 1, %s667_s10  }
  0x23   : > { %137 = sbr.rel (%p134_p1) target bundleno = 343 (0x157), region = 28  ;;  %s508_s26 = sshll.u32 (!%p134_p1), %s783_s25, 5 }
  0x24   : > { %s140_s27 = scalar_lea.sflag (!%p134_p1), [#allocation3], %s783_s25  ;;  %s143_s28 = scalar_lea.vmem (!%p134_p1), [#allocation2], %s508_s26 }
  0x28   : > { %654 = dma.done.wait (%p741_p6), %s140_s27, 512  }
  0x29   : > { %656 = vsyncadd (%p741_p6), %s140_s27, 4294966784  ;;  %vm180_vm0 = vcmask 1046528   ;;  %v510_v0 = vld [vmem:[%s143_s28 + $0x10] ss:$2 sm:$0xff]  ;;  %v512_v1 = vld [vmem:[%s143_s28 + $0x11] ss:$2 sm:$0xff] }
  0x2a   : > { %v167_v2 = vld [vmem:[%s143_s28] ss:$2 sm:$0xff]  ;;  %v175_v3 = vmax.f32 %v510_v0, %v512_v1  ;;  %v514_v4 = vld [vmem:[%s143_s28 + $0x12] ss:$2 sm:$0x7f]  ;;  %s679_s29 = smov 127  }
  0x2b   : > { %v511_v5 = vld [vmem:[%s143_s28 + $0x1] ss:$2 sm:$0xff]  ;;  %v182_v6 = vsel %vm180_vm0, %v514_v4, -inf  ;;  %v513_v8 = vld [vmem:[%s143_s28 + $0x2] ss:$2 sm:$0x7f] }
  0x2c   : > { %v174_v7 = vmax.f32 %v167_v2, %v511_v5  ;;  %v184_v9 = vmax.f32 %v175_v3, %v182_v6  ;;  %v181_v10 = vsel %vm180_vm0, %v513_v8, -inf  ;;  %s680_s30 = smov 126   ;;  %v210_v12 = vld [vmem:[%s833_s1 + $0x8] sm:$0xff]  ;;  %v209_v14 = vld [vmem:[%s833_s1] sm:$0xff]  ;;  %vm193_vm1 = vcmask 121856   ;;  %s509_s6 = sshll.u32 %s783_s25, 4 }
  0x2d   : > { %v232_v13 = vand.u32 4294901760, %v210_v12  ;;  %v234_v16 = vand.u32 4294901760, %v209_v14  ;;  %vm204_vm2 = vcmask 113664   ;;  %vm211_vm3 = vcmask 130048   ;;  %s522_s7 = sshll.u32 %s719_s13, 4  ;;  %s164_s17 = scalar_lea.vmem [#allocation5], %s509_s6 }
  0x2e   : > { %v183_v11 = vmax.f32 %v174_v7, %v181_v10  ;;  %189 = vrot.lane.b32.xlu0 %v184_v9, %s679_s29  ;;  %vm408_vm4 = vcmask 64512   ;;  %s423_s16 = scalar_lea.hbm %s834_s2, %s522_s7  ;;  %s424_s19 = sshll.u32 %s164_s17, 4  ;;  %s425_s19 = int_to_ptr.vmem [resolvable:$true] %s424_s19 }
  0x2f   : > { %v268_v15 = vsub.f32 %v210_v12, %v232_v13  ;;  %233 = vmatpush.msra.mxu0 %v232_v13  ;;  %523 = vmatpush.msra.mxu2 %v232_v13  ;;  %v274_v18 = vsub.f32 %v209_v14, %v234_v16  ;;  %s426_s23 = sshll.u32 %s423_s16, 4  ;;  %s412_s13 = scalar_lea.sflag [#allocation4], %s783_s25  ;;  %s427_s23 = int_to_ptr.hbm [resolvable:$true] %s426_s23 }
  0x30   : > { %187 = vrot.lane.b32.xlu1 %v183_v11, %s679_s29  ;;  %s623_s24 = sshra.s32 %s427_s23, 4  ;;  %s629_s29 = scalar_lea.hbm %s834_s2, 64  ;;  %s624_s24 = int_to_ptr.hbm [resolvable:$true] %s623_s24 }
  0x31   : > { %v269_v17 = vand.u32 4294901760, %v268_v15  ;;  %235 = vmatpush.msra.mxu0 %v234_v16  ;;  %524 = vmatpush.msra.mxu2 %v234_v16  ;;  %v275_v20 = vand.u32 4294901760, %v274_v18  ;;  %s625_s26 = scalar_lea.hbm %s624_s24, 16  ;;  %p630_p0 = scmp.lt.s32.totalorder %s624_s24, %s834_s2 }
  0x32   : > { %p626_p6 = scmp.ne.s32.totalorder %s624_s24, %s625_s26  ;;  %p631_p2 = scmp.lt.s32.totalorder %s629_s29, %s625_s26 }
  0x33   : > { %304 = vmatpush.msrb.mxu2 %v268_v15  ;;  %v270_v19 = vsub.f32 %v268_v15, %v269_v17  ;;  %367 = vmatpush.msrb.mxu0 %v269_v17  ;;  %v276_v22 = vsub.f32 %v274_v18, %v275_v20 }
  0x34   : > { %p627_p12 = pnand %p626_p6, %p747_p10  ;;  %p632_p3 = por %p631_p2, %p630_p0 }
  0x35   : > { %307 = vmatpush.msrb.mxu2 %v274_v18  ;;  %v271_v21 = vand.u32 4294901760, %v270_v19  ;;  %371 = vmatpush.msrb.mxu0 %v275_v20  ;;  %v277_v23 = vand.u32 4294901760, %v276_v22 }
  0x36   : > { %200 = vrot.lane.b32.xlu0 %v184_v9, %s680_s30  ;;  %p628_p13 = pneg %p627_p12 }
  0x37   : > { %272 = vmatpush.msra.mxu1 %v271_v21  ;;  %525 = vmatpush.msra.mxu3 %v271_v21 }
  0x38   : > { %198 = vrot.lane.b32.xlu1 %v183_v11, %s680_s30  ;;  %p633_p4 = pnand %p632_p3, %p628_p13 }
  0x39   : > { %278 = vmatpush.msra.mxu1 %v277_v23  ;;  %526 = vmatpush.msra.mxu3 %v277_v23 }
  0x3b   : > { %334 = vmatpush.msrb.mxu3 %v232_v13  ;;  %396 = vmatpush.msrb.mxu1 %v232_v13 }
  0x3d   : > { %336 = vmatpush.msrb.mxu3 %v234_v16  ;;  %398 = vmatpush.msrb.mxu1 %v234_v16 }
  0xa0   : > { %v190_v24 = vpop.permute.xlu0 %189 }
  0xa1   : > { %v195_v27 = vsel %vm193_vm1, %v190_v24, -inf }
  0xa2   : > { %v188_v25 = vpop.permute.xlu1 %187  ;;  %v197_v29 = vmax.f32 %v184_v9, %v195_v27 }
  0xa3   : > { %v194_v26 = vsel %vm193_vm1, %v188_v25, -inf }
  0xa4   : > { %v196_v28 = vmax.f32 %v183_v11, %v194_v26 }
  0xa8   : > { %v201_v30 = vpop.permute.xlu0 %200 }
  0xa9   : > { %v206_v31 = vsel %vm204_vm2, %v201_v30, -inf }
  0xaa   : > { %v199_v32 = vpop.permute.xlu1 %198  ;;  %v208_v33 = vmax.f32 %v197_v29, %v206_v31 }
  0xab   : > { %v205_v34 = vsel %vm204_vm2, %v199_v32, -inf }
  0xac   : > { %v207_v35 = vmax.f32 %v196_v28, %v205_v34  ;;  %v216_v36 = vsel %vm211_vm3, %v208_v33, 0 }
  0xad   : > { %v244_v37 = vand.u32 4294901760, %v216_v36 }
  0xae   : > { %v213_v38 = vsel %vm211_vm3, %v207_v35, 0 }
  0xaf   : > { %v236_v39 = vand.u32 4294901760, %v213_v38  ;;  %v245_v40 = vsub.f32 %v216_v36, %v244_v37  ;;  %284 = vmatmul.f32.vlgmr.msra.gmra.mxu3 %v244_v37 }
  0xb1   : > { %v237_v41 = vsub.f32 %v213_v38, %v236_v39  ;;  %280 = vmatmul.f32.vlgmr.msra.gmra.mxu1 %v236_v39  ;;  %v246_v42 = vand.u32 4294901760, %v245_v40 }
  0xb3   : > { %v238_v43 = vand.u32 4294901760, %v237_v41  ;;  %v247_v44 = vsub.f32 %v245_v40, %v246_v42 }
  0xb5   : > { %v239_v45 = vsub.f32 %v237_v41, %v238_v43  ;;  %v248_v46 = vand.u32 4294901760, %v247_v44 }
  0xb7   : > { %v240_v47 = vand.u32 4294901760, %v239_v45  ;;  %249 = vmatmul.f32.vlgmr.msra.gmra.mxu2 %v248_v46  ;;  %340 = vmatmul.f32.vlgmr.msrb.gmra.mxu3 %v238_v43 }
  0xb9   : > { %241 = vmatmul.f32.vlgmr.msra.gmra.mxu0 %v240_v47  ;;  %400 = vmatmul.f32.vlgmr.msrb.gmra.mxu1 %v236_v39 }
  0xbf   : > { %310 = vmatmul.f32.vlgmr.msrb.gmra.mxu2 %v237_v41  ;;  %346 = vmatmul.f32.gmra.mxu3 %v246_v42 }
  0xc1   : > { %373 = vmatmul.f32.vlgmr.msrb.gmra.mxu0 %v236_v39  ;;  %404 = vmatmul.f32.gmra.mxu1 %v244_v37 }
  0xc7   : > { %315 = vmatmul.f32.gmra.mxu2 %v245_v40 }
  0xc9   : > { %377 = vmatmul.f32.gmra.mxu0 %v244_v37 }
 0x12e   : > { %v281_v51 = vpop.f32.mrf.mxu1 }
 0x132   : > { %v285_v48 = vpop.f32.mrf.mxu3 }
 0x136   : > { %v242_v49 = vpop.f32.mrf.mxu0  ;;  %v401_v58 = vpop.f32.mrf.mxu1 }
 0x137   : > { %v282_v52 = vadd.f32 %v281_v51, %v242_v49 }
 0x13a   : > { %v250_v50 = vpop.f32.mrf.mxu2  ;;  %v341_v53 = vpop.f32.mrf.mxu3 }
 0x13b   : > { %v286_v60 = vadd.f32 %v285_v48, %v250_v50 }
 0x13e   : > { %v374_v56 = vpop.f32.mrf.mxu0  ;;  %v405_v4 = vpop.f32.mrf.mxu1 }
 0x142   : > { %v311_v54 = vpop.f32.mrf.mxu2  ;;  %v347_v0 = vpop.f32.mrf.mxu3 }
 0x143   : > { %v312_v55 = vadd.f32 %v311_v54, %v282_v52 }
 0x145   : > { %v342_v57 = vadd.f32 %v341_v53, %v312_v55 }
 0x146   : > { %v378_v2 = vpop.f32.mrf.mxu0 }
 0x147   : > { %v375_v59 = vadd.f32 %v374_v56, %v342_v57 }
 0x149   : > { %v402_v61 = vadd.f32 %v401_v58, %v375_v59 }
 0x14a   : > { %v316_v62 = vpop.f32.mrf.mxu2 }
 0x14b   : > { %409 = vst.msk [vmem:[%s164_s17] sm:$0xff] %vm408_vm4, %v402_v61  ;;  %v317_v63 = vadd.f32 %v316_v62, %v286_v60 }
 0x14d   : > { %v348_v1 = vadd.f32 %v347_v0, %v317_v63 }
 0x14f   : > { %v379_v3 = vadd.f32 %v378_v2, %v348_v1 }
 0x151   : > { %v406_v5 = vadd.f32 %v405_v4, %v379_v3 }
 0x153   : > { %410 = vst.msk [vmem:[%s164_s17 + $0x8] sm:$0xff] %vm408_vm4, %v406_v5 }
 0x154   : > { %636 = shalt.err (!%p633_p4)
}
 0x155   : > { %s681_s25 = smov 128   ;;  %s682_s3 = smov 8  }
 0x156   : > { %529 = dma.vmem_to_hbm [thread:$0]  (%p747_p10), %s425_s19, 256, %s427_s23, %s412_s13, %s681_s25, %s681_s25, %s682_s3  }
 0x157 PF: > { %p540_p5 = scmp.ge.s32.totalorder %s675_s12, 2  ;;  %s441_s4 = sand.u32 1, %s663_s9  }
 0x158   : > { %s442_s5 = scalar_lea.sflag [#allocation4], %s441_s4 }
 0x159   : > { %p536_p7 = pnand %p540_p5, %p751_p11 }
 0x15b   : > { %p537_p8 = pneg %p536_p7 }
 0x15d   : > { %658 = dma.done.wait (%p537_p8), %s442_s5, 256  }
 0x15e   : > { %660 = vsyncadd (%p537_p8), %s442_s5, 4294967040  ;;  %p15_p9 = scmp.ge.s32.totalorder %s723_s15, 6   ;;  %s840_s9 = smov %s667_s10 }
 0x15f   : > { %s841_s10 = smov %s671_s11  ;;  %s842_s11 = smov %s735_s18 }
 0x160   : > { %s843_s12 = smov %s723_s15  ;;  %17 = sbr.rel (!%p15_p9) target bundleno = 5 (0x5), region = 78 }
 0x165   :  { %448 = vsyncpa [#allocation3], 1 }
 0x166   :  { %450 = vsyncpa [#allocation3 + $0x1], 1 }
 0x167   :  { %451 = vsyncpa [#allocation4], 1 }
 0x168   :  { %453 = vsyncpa [#allocation4 + $0x1], 1 }

</bundles_post_ra>
